<compile_context>
chip_gen: v7x
topology: tpu7x:2x2x1
jax: 0.10.0
libtpu: 0.0.40
codegen_flags: <defaults>
</compile_context>

<pallas_src>
import functools
import math

import jax
import jax.numpy as jnp
from jax.experimental import pallas as pl
from jax.experimental.pallas import tpu as pltpu

_CLAMP_LO = 1e-6
_CLAMP_HI = 1e6


# ----------------------------------------------------------------------------- helpers


def _round_up(x, m):
    return ((x + m - 1) // m) * m


def _cdiv(a, b):
    return -(-a // b)


def _vmem_budgets():
    """Returns (scoped-VMEM limit to request, total byte budget for our tile buffers)."""
    try:
        cap = int(pltpu.get_tpu_info().vmem_capacity_bytes)
    except Exception:  # pragma: no cover - conservative fallback (v7x per-TC VMEM)
        cap = 64 * 1024 * 1024
    limit = max(16 * 1024 * 1024, min(cap // 2, 48 * 1024 * 1024))  # v7x:32MiB, v5e/v6e:48MiB
    tile_budget = max(8 * 1024 * 1024, limit - 8 * 1024 * 1024)     # headroom for scratch
    return limit, tile_budget


def _inv_consts(n):
    inv_n = 1.0 / n
    # n == 1 -> NaN result, same as torch.var(unbiased=True) over a length-1 axis.
    inv_nm1 = (1.0 / (n - 1)) if n > 1 else float("nan")
    return inv_n, inv_nm1


def _logvar_jnp(x, dim):
    """XLA fallback for tiny problems (lane occupancy / fixed overhead dominate)."""
    var = jnp.var(x.astype(jnp.float32), axis=dim, keepdims=True, ddof=1)
    return jnp.log(jnp.clip(var, _CLAMP_LO, _CLAMP_HI)).astype(x.dtype)


# ----------------------------------------------------------------------------- kernels


def _logvar_rowblock_kernel(x_ref, o_ref, *, inv_n, inv_nm1):
    """One block spans the full reduction width. x_ref: (tr, W); o_ref: (tr, 1)."""
    x = x_ref[...].astype(jnp.float32)
    y = x - x[:, 0:1]                                   # per-row anchor (shift-invariant var)
    s = jnp.sum(y, axis=-1, keepdims=True)
    ss = jnp.sum(y * y, axis=-1, keepdims=True)
    var = (ss - (s * s) * inv_n) * inv_nm1
    o_ref[...] = jnp.log(jnp.clip(var, _CLAMP_LO, _CLAMP_HI)).astype(o_ref.dtype)


def _logvar_wtiled_kernel(x_ref, o_ref, s_acc, ss_acc, anchor,
                          *, w_total, tw, n_w_blocks, inv_n, inv_nm1):
    """Reduction width tiled along an 'arbitrary' grid axis with small VMEM accumulators.

    x_ref: (tr, tw); o_ref: (tr, 1); scratch: three (tr, 1) f32 buffers.
    """
    k = pl.program_id(1)
    x = x_ref[...].astype(jnp.float32)

    @pl.when(k == 0)
    def _init():
        anchor[...] = x[:, 0:1]
        s_acc[...] = jnp.zeros_like(s_acc)
        ss_acc[...] = jnp.zeros_like(ss_acc)

    y = x - anchor[...]
    if w_total % tw != 0:
        # Mask the ragged columns of the last W block (static branch).
        col = k * tw + jax.lax.broadcasted_iota(jnp.int32, x.shape, 1)
        y = jnp.where(col < w_total, y, 0.0)
    s_acc[...] = s_acc[...] + jnp.sum(y, axis=-1, keepdims=True)
    ss_acc[...] = ss_acc[...] + jnp.sum(y * y, axis=-1, keepdims=True)

    @pl.when(k == n_w_blocks - 1)
    def _finalize():
        s = s_acc[...]
        var = (ss_acc[...] - (s * s) * inv_n) * inv_nm1
        o_ref[...] = jnp.log(jnp.clip(var, _CLAMP_LO, _CLAMP_HI)).astype(o_ref.dtype)


def _logvar_midaxis_kernel(x_ref, o_ref, *, inv_n, inv_nm1):
    """Reduce the middle (sublane) axis. x_ref: (ta, R, tb); o_ref: (ta, 1, tb)."""
    x = x_ref[...].astype(jnp.float32)
    y = x - x[:, 0:1, :]
    s = jnp.sum(y, axis=1, keepdims=True)
    ss = jnp.sum(y * y, axis=1, keepdims=True)
    var = (ss - (s * s) * inv_n) * inv_nm1
    o_ref[...] = jnp.log(jnp.clip(var, _CLAMP_LO, _CLAMP_HI)).astype(o_ref.dtype)


# ----------------------------------------------------------------------------- wrappers


def _logvar_last_axis(x2d, block_rows=None, block_w=None):
    """x2d: (rows, W); reduce over W (lanes). Returns (rows, 1)."""
    rows, w = x2d.shape
    limit, budget = _vmem_budgets()
    inv_n, inv_nm1 = _inv_consts(w)

    # ---- reduction-axis (lane) tile ----
    pad_w = _round_up(w, 128)
    out_row_bytes = 2 * 128 * 4                       # double-buffered (tr, 1) output, lane padded
    full_w_row_bytes = 2 * pad_w * 4 + out_row_bytes  # input double buffers + output
    if block_w is not None and block_w < w:
        tw = max(128, (block_w // 128) * 128)
    elif 8 * full_w_row_bytes > budget:
        # Even an 8-row, full-width tile blows the budget: tile W with accumulators.
        tr_target = min(128, max(8, _round_up(rows, 8)))
        max_pad_tw = (budget // tr_target - 5 * 128 * 4) // (2 * 4)
        tw = max(128, (max_pad_tw // 128) * 128)
    else:
        tw = w
    if tw > w:
        tw = w
    n_w = _cdiv(w, tw)

    # ---- row tile (account for input, output and scratch buffers) ----
    pad_tw = _round_up(tw, 128)
    scratch_row_bytes = (3 * 128 * 4) if n_w > 1 else 0
    per_row_bytes = 2 * pad_tw * 4 + out_row_bytes + scratch_row_bytes
    if block_rows is not None:
        tr = block_rows
    else:
        tr = max(8, ((budget // per_row_bytes) // 8) * 8)
        if tr >= rows and rows > 16:
            tr = _round_up(_cdiv(rows, 2), 8)         # >= 2 blocks: pipelining + megacore
    if tr >= rows:
        tr = rows                                     # full extent (legal even if not %8)
    else:
        tr = max(8, (tr // 8) * 8)
    n_r = _cdiv(rows, tr)

    out_shape = jax.ShapeDtypeStruct((rows, 1), x2d.dtype)

    if n_w == 1:
        kernel = functools.partial(_logvar_rowblock_kernel, inv_n=inv_n, inv_nm1=inv_nm1)
        return pl.pallas_call(
            kernel,
            out_shape=out_shape,
            grid=(n_r,),
            in_specs=[pl.BlockSpec((tr, w), lambda i: (i, 0))],
            out_specs=pl.BlockSpec((tr, 1), lambda i: (i, 0)),
            compiler_params=pltpu.CompilerParams(
                dimension_semantics=("parallel",),
                vmem_limit_bytes=limit,
            ),
        )(x2d)

    kernel = functools.partial(
        _logvar_wtiled_kernel,
        w_total=w, tw=tw, n_w_blocks=n_w, inv_n=inv_n, inv_nm1=inv_nm1)
    return pl.pallas_call(
        kernel,
        out_shape=out_shape,
        grid=(n_r, n_w),
        in_specs=[pl.BlockSpec((tr, tw), lambda i, k: (i, k))],
        out_specs=pl.BlockSpec((tr, 1), lambda i, k: (i, 0)),
        scratch_shapes=[
            pltpu.VMEM((tr, 1), jnp.float32),   # sum(y)
            pltpu.VMEM((tr, 1), jnp.float32),   # sum(y*y)
            pltpu.VMEM((tr, 1), jnp.float32),   # per-row anchor
        ],
        compiler_params=pltpu.CompilerParams(
            dimension_semantics=("parallel", "arbitrary"),
            vmem_limit_bytes=limit,
        ),
    )(x2d)


def _logvar_mid_axis(x3d):
    """x3d: (A, R, B); reduce over the middle axis R. Returns (A, 1, B)."""
    a_dim, r, b_dim = x3d.shape
    limit, budget = _vmem_budgets()
    inv_n, inv_nm1 = _inv_consts(r)

    r_pad = _round_up(r, 8)
    pad_b = _round_up(b_dim, 128)
    # Bytes per 128-lane column slab (ta=1): double-buffered input + double-buffered
    # (1 -> 8 sublane-padded) output.
    per_lane128_bytes = (2 * r_pad + 2 * 8) * 128 * 4
    if per_lane128_bytes * (pad_b // 128) <= budget:
        tb = b_dim
    else:
        tb = max(128, (budget // per_lane128_bytes) * 128)
    if tb > b_dim:
        tb = b_dim
    n_b = _cdiv(b_dim, tb)

    pad_tb = _round_up(tb, 128)
    per_a_bytes = (2 * r_pad + 2 * 8) * pad_tb * 4
    ta = max(1, budget // per_a_bytes)
    ta = min(ta, a_dim)
    if ta >= a_dim and n_b == 1 and a_dim > 1:
        ta = _cdiv(a_dim, 2)                          # >= 2 blocks: pipelining + megacore
    n_a = _cdiv(a_dim, ta)

    kernel = functools.partial(_logvar_midaxis_kernel, inv_n=inv_n, inv_nm1=inv_nm1)
    return pl.pallas_call(
        kernel,
        out_shape=jax.ShapeDtypeStruct((a_dim, 1, b_dim), x3d.dtype),
        grid=(n_a, n_b),
        in_specs=[pl.BlockSpec((ta, r, tb), lambda i, j: (i, 0, j))],
        out_specs=pl.BlockSpec((ta, 1, tb), lambda i, j: (i, 0, j)),
        compiler_params=pltpu.CompilerParams(
            dimension_semantics=("parallel", "parallel"),
            vmem_limit_bytes=limit,
        ),
    )(x3d)


def log_var_layer(x, dim=3, *, block_rows=None, block_w=None, min_pallas_lanes=64):
    """JAX/Pallas equivalent of LogVarLayer(dim).forward(x): log(clamp(var, 1e-6, 1e6))."""
    ndim = x.ndim
    dim = dim % ndim
    r = x.shape[dim]

    # ---- reduction over the last axis (FBCNet's usual dim=3 on a 4-D tensor) ----
    if dim == ndim - 1:
        lead = x.shape[:-1]
        rows = int(math.prod(lead)) if lead else 1
        if r < min_pallas_lanes and block_rows is None and block_w is None:
            # Tiny reduction width: mostly-empty vregs + pallas_call overhead -> use XLA.
            return _logvar_jnp(x, dim)
        out2d = _logvar_last_axis(x.reshape(rows, r), block_rows=block_rows, block_w=block_w)
        return out2d.reshape(lead + (1,))

    # ---- reduction over a non-last axis: view as (A, R, B), no wrapper transpose ----
    a_dim = int(math.prod(x.shape[:dim])) if dim > 0 else 1
    b_dim = int(math.prod(x.shape[dim + 1:]))
    out_shape = x.shape[:dim] + (1,) + x.shape[dim + 1:]

    if b_dim < min_pallas_lanes:
        return _logvar_jnp(x, dim)

    _, budget = _vmem_budgets()
    r_pad = _round_up(r, 8)
    if (2 * r_pad + 16) * 128 * 4 > budget:
        # TODO(synk): tile the (extremely long) reduced axis inside the middle-axis
        # kernel instead of paying this moveaxis HBM pass.
        xt = jnp.moveaxis(x, dim, -1)
        out2d = _logvar_last_axis(xt.reshape(a_dim * b_dim, r))
        return jnp.moveaxis(out2d.reshape(xt.shape[:-1] + (1,)), -1, dim)

    out3d = _logvar_mid_axis(x.reshape(a_dim, r, b_dim))
    return out3d.reshape(out_shape)


# ----------------------------------------------------------------------------- demo


if __name__ == "__main__":
    key = jax.random.PRNGKey(0)
    k1, k2, k3, k4 = jax.random.split(key, 4)

    def ref_logvar(x, dim):
        v = jnp.var(x.astype(jnp.float32), axis=dim, keepdims=True, ddof=1)
        return jnp.log(jnp.clip(v, _CLAMP_LO, _CLAMP_HI)).astype(x.dtype)

    # 1) FBCNet-style (batch, filters, strided-windows, time); reduce over the last (time)
    #    axis. Mean-shifted input to exercise the anchored single-pass variance.
    x1 = jax.random.normal(k1, (2, 4, 16, 128), dtype=jnp.float32) * 0.5 + 1.0
    o1 = jax.block_until_ready(log_var_layer(x1, dim=3))
    r1 = ref_logvar(x1, 3)
    assert o1.shape == (2, 4, 16, 1), o1.shape
    assert jnp.allclose(o1, r1, atol=1e-4, rtol=1e-4), float(jnp.max(jnp.abs(o1 - r1)))

    # 2) Non-last reduction axis -> middle-axis kernel (no wrapper HBM transpose),
    #    with a ragged leading-dim block (A=15, ta=8).
    x2 = jax.random.normal(k2, (3, 5, 32, 128), dtype=jnp.float32)
    o2 = jax.block_until_ready(log_var_layer(x2, dim=2))
    r2 = ref_logvar(x2, 2)
    assert o2.shape == (3, 5, 1, 128), o2.shape
    assert jnp.allclose(o2, r2, atol=1e-4, rtol=1e-4), float(jnp.max(jnp.abs(o2 - r2)))

    # 3) Forced small tiles -> exercises the W-tiled accumulator kernel + ragged-W mask.
    x3 = jax.random.normal(k3, (2, 4, 16, 320), dtype=jnp.float32)
    o3 = jax.block_until_ready(log_var_layer(x3, dim=3, block_rows=16, block_w=128))
    r3 = ref_logvar(x3, 3)
    assert o3.shape == (2, 4, 16, 1), o3.shape
    assert jnp.allclose(o3, r3, atol=1e-4, rtol=1e-4), float(jnp.max(jnp.abs(o3 - r3)))

    # 4) Tiny reduction width (original FBCNet-like toy shape) -> XLA fallback path.
    x4 = jax.random.normal(k4, (2, 4, 16, 16), dtype=jnp.float32)
    o4 = jax.block_until_ready(log_var_layer(x4, dim=3))
    r4 = ref_logvar(x4, 3)
    assert o4.shape == (2, 4, 16, 1), o4.shape
    assert jnp.allclose(o4, r4, atol=1e-5, rtol=1e-5), float(jnp.max(jnp.abs(o4 - r4)))

    print("KERNEL_OK")
</pallas_src>

<mosaic_0001>
module attributes {stable_mosaic.version = 11 : i64} {
  func.func @_logvar_rowblock_kernel(%arg0: i32, %arg1: memref<64x128xf32, #tpu.memory_space<vmem>>, %arg2: memref<64x1xf32, #tpu.memory_space<vmem>>) attributes {dimension_semantics = [#tpu.dimension_semantics<parallel>], iteration_bounds = array<i64: 2>, scalar_prefetch = 0 : i64, scratch_operands = 0 : i64, tpu.core_type = #tpu.core_type<tc>, window_params = [{transform_indices = @transform_0, window_bounds = array<i64: 64, 128>}, {transform_indices = @transform_1, window_bounds = array<i64: 64, 1>}]} {
    %c0 = arith.constant 0 : index
    %c0_0 = arith.constant 0 : index
    %0 = vector.load %arg1[%c0, %c0_0] : memref<64x128xf32, #tpu.memory_space<vmem>>, vector<64x128xf32>
    %1 = vector.extract_strided_slice %0 {offsets = [0, 0], sizes = [64, 1], strides = [1, 1]} : vector<64x128xf32> to vector<64x1xf32>
    %2 = vector.broadcast %1 : vector<64x1xf32> to vector<64x128xf32>
    %3 = arith.subf %0, %2 : vector<64x128xf32>
    %cst = arith.constant dense<0.000000e+00> : vector<64xf32>
    %4 = vector.multi_reduction <add>, %3, %cst [1] : vector<64x128xf32> to vector<64xf32>
    %5 = vector.shape_cast %4 : vector<64xf32> to vector<64x1xf32>
    %6 = arith.mulf %3, %3 : vector<64x128xf32>
    %cst_1 = arith.constant dense<0.000000e+00> : vector<64xf32>
    %7 = vector.multi_reduction <add>, %6, %cst_1 [1] : vector<64x128xf32> to vector<64xf32>
    %8 = vector.shape_cast %7 : vector<64xf32> to vector<64x1xf32>
    %9 = arith.mulf %5, %5 : vector<64x1xf32>
    %cst_2 = arith.constant 7.812500e-03 : f32
    %10 = vector.broadcast %cst_2 : f32 to vector<64x1xf32>
    %11 = arith.mulf %9, %10 : vector<64x1xf32>
    %12 = arith.subf %8, %11 : vector<64x1xf32>
    %cst_3 = arith.constant 0.00787401571 : f32
    %13 = vector.broadcast %cst_3 : f32 to vector<64x1xf32>
    %14 = arith.mulf %12, %13 : vector<64x1xf32>
    %cst_4 = arith.constant 9.99999997E-7 : f32
    %cst_5 = arith.constant 1.000000e+06 : f32
    %15 = vector.broadcast %cst_4 : f32 to vector<64x1xf32>
    %16 = arith.maximumf %15, %14 : vector<64x1xf32>
    %17 = vector.broadcast %cst_5 : f32 to vector<64x1xf32>
    %18 = arith.minimumf %17, %16 : vector<64x1xf32>
    %19 = math.log %18 : vector<64x1xf32>
    %c0_6 = arith.constant 0 : index
    %c0_7 = arith.constant 0 : index
    %20 = vector.load %arg2[%c0_6, %c0_7] : memref<64x1xf32, #tpu.memory_space<vmem>>, vector<64x1xf32>
    tpu.vector_store %arg2[%c0_6, %c0_7], %19 {strides = array<i32>} : memref<64x1xf32, #tpu.memory_space<vmem>>, vector<64x1xf32>,
    return
  }
  func.func @transform_0(%arg0: i32) -> (i32, i32) {
    %c0_i32 = arith.constant 0 : i32
    %c0_i32_0 = arith.constant 0 : i32
    return %arg0, %c0_i32 : i32, i32
  }
  func.func @transform_1(%arg0: i32) -> (i32, i32) {
    %c0_i32 = arith.constant 0 : i32
    %c0_i32_0 = arith.constant 0 : i32
    return %arg0, %c0_i32 : i32, i32
  }
}

</mosaic_0001>

<bundles_post_ra>
// kernel: tpu_custom_call.1
= control target key start
LH: loop header
LB: loop body
LE: loop exit
PB: predicated region body
PF: predicated region fallthrough
CT: control target
= control target key end

     0   :  { %6 = vsyncpa [#allocation3], 0  ;;  %s655_s0 = inlined_call_operand.hbm [shape: f32[128,128], index: 0, kind: input, shape index: {}]   ;;  %s656_s1 = inlined_call_operand.vmem [shape: f32[128,1], index: 1, kind: output, shape index: {}]  }
   0x1   :  { %8 = vsyncpa [#allocation3 + $0x1], 0  ;;  %s529_s6 = smov 0   ;;  %s531_s7 = smov 0  }
   0x2   :  { %s533_s8 = smov 0   ;;  %s535_s9 = smov 0  }
   0x3 LB: > { %s375_s10 = sadd.s32 4294967295, %s513_s9   ;;  %s549_s11 = sadd.s32 1, %s513_s9   ;;  %s513_s9 = sphi %s535_s9, %s663_s9   ;;  %s509_s8 = sphi %s533_s8, %s662_s8   ;;  %s505_s7 = sphi %s531_s7, %s661_s7   ;;  %s501_s6 = sphi %s529_s6, %s660_s6  }
   0x4   : > { %s18_s12 = ssub.s32 %s513_s9, %s549_s11  ;;  %s21_s13 = sadd.s32 1, %s509_s8 }
   0x5   : > { %p19_p0 = scmp.eq.s32.totalorder %s18_s12, 0  ;;  %p28_p1 = scmp.ne.s32.totalorder %s509_s8, %s505_s7 }
   0x6   : > { %p29_p2 = scmp.eq.s32.totalorder %s513_s9, 0  ;;  %p34_p3 = scmp.ne.s32.totalorder %s505_s7, %s501_s6 }
   0x7   : > { %s559_s14 = scalar_select %p19_p0, %s509_s8, %s21_s13  }
   0x8   : > { %p30_p4 = por %p29_p2, %p28_p1  ;;  %p35_p5 = scmp.eq.s32.totalorder %s375_s10, 0 }
   0x9   : > { %p395_p6 = scmp.lt.s32.totalorder %s513_s9, 2  ;;  %s84_s16 = sand.u32 1, %s509_s8  }
   0xa   : > { %p564_p7 = por %p35_p5, %p34_p3  ;;  %s379_s17 = sshll.u32 %s84_s16, 6 }
   0xb   : > { %s388_s18 = sshll.u32 %s513_s9, 10  ;;  %s88_s22 = scalar_lea.vmem [#allocation2], %s379_s17 }
   0xc   : > { %s573_s21 = scalar_lea.hbm %s655_s0, %s388_s18  ;;  %s95_s23 = sshll.u32 %s88_s22, 4  ;;  %s575_s23 = int_to_ptr.vmem [resolvable:$true] %s95_s23 }
   0xd   : > { %p577_p8 = pnand %p395_p6, %p30_p4  ;;  %s582_s25 = scalar_lea.sflag [#allocation3], %s84_s16 }
   0xe   : > { %s449_s26 = scalar_lea.hbm %s573_s21, 1024  ;;  %s454_s29 = scalar_lea.hbm %s655_s0, 2048 }
   0xf   : > { %p450_p10 = scmp.ne.s32.totalorder %s573_s21, %s449_s26  ;;  %p451_p11 = pneg %p577_p8 }
  0x10   : > { %p455_p0 = scmp.lt.u32.totalorder %s573_s21, %s655_s0  ;;  %p456_p1 = scmp.lt.u32.totalorder %s454_s29, %s449_s26 }
  0x11   : > { %p452_p12 = pnand %p451_p11, %p450_p10  ;;  %p458_p3 = scmp.lt.u32.totalorder %s449_s26, %s573_s21 }
  0x12   : > { %p457_p2 = por %p456_p1, %p455_p0 }
  0x13   : > { %p453_p13 = pneg %p452_p12 }
  0x14   : > { %p459_p4 = por %p458_p3, %p457_p2 }
  0x16   : > { %p460_p5 = pnand %p459_p4, %p453_p13 }
  0x18   : > { %463 = shalt.err (!%p460_p5)
}
  0x19   : > { %s464_s3 = scalar_lea.vmem %s575_s23, 1024  ;;  %s515_s4 = smov [#allocation2]  }
  0x1a   : > { %p465_p6 = scmp.ne.s32.totalorder %s575_s23, %s464_s3  ;;  %s469_s5 = sshll.u32 %s515_s4, 4  ;;  %s470_s5 = int_to_ptr.vmem [resolvable:$false] %s469_s5 }
  0x1b   : > { %s471_s6 = scalar_lea.vmem %s470_s5, 2048  ;;  %p472_p9 = scmp.lt.s32.totalorder %s575_s23, %s470_s5 }
  0x1c   : > { %p467_p10 = pnand %p465_p6, %p451_p11  ;;  %p473_p0 = scmp.lt.s32.totalorder %s471_s6, %s464_s3 }
  0x1e   : > { %p468_p12 = pneg %p467_p10  ;;  %p474_p1 = por %p473_p0, %p472_p9 }
  0x20   : > { %p475_p2 = pnand %p474_p1, %p468_p12 }
  0x22   : > { %478 = shalt.err (!%p475_p2)
}
  0x23   : > { %s516_s12 = smov 128   ;;  %s517_s13 = smov 8  }
  0x24   : > { %394 = dma.hbm_to_vmem [thread:$0]  (!%p577_p8), %s573_s21, 1024, %s575_s23, %s582_s25, %s516_s12, %s516_s12, %s517_s13  }
  0x25   : > { %p103_p11 = scmp.lt.s32.totalorder %s513_s9, 3  ;;  %p659_p13 = scmp.ge.s32.totalorder %s513_s9, 1 }
  0x27   : > { %p104_p3 = pnand %p659_p13, %p103_p11 }
  0x28   : > { %s109_s16 = sand.u32 (!%p104_p3), 1, %s505_s7  }
  0x29   : > { %107 = sbr.rel (%p104_p3) target bundleno = 377 (0x179), region = 24  ;;  %s383_s17 = sshll.u32 (!%p104_p3), %s109_s16, 6 }
  0x2a   : > { %s110_s18 = scalar_lea.sflag (!%p104_p3), [#allocation3], %s109_s16  ;;  %s113_s19 = scalar_lea.vmem (!%p104_p3), [#allocation2], %s383_s17 }
  0x30   : > { %496 = dma.done.wait (%p564_p7), %s110_s18, 1024  }
  0x31   : > { %498 = vsyncadd (%p564_p7), %s110_s18, 4294966272  ;;  %v518_v0 = vmov 0   ;;  %v141_v1 = vld [vmem:[%s113_s19 + $0x10] sm:$0xff]  ;;  %v139_v2 = vld [vmem:[%s113_s19] sm:$0xff]  ;;  %s384_s15 = sshll.u32 %s375_s10, 3  ;;  %vm299_vm0 = vcmask 7168  }
  0x32   : > { %432 = vset.pattern.permute.xlu1 %v518_v0  ;;  %431 = vset.pattern.permute.xlu0 %v518_v0  ;;  %v142_v3 = vld [vmem:[%s113_s19 + $0x18] sm:$0xff]  ;;  %v140_v4 = vld [vmem:[%s113_s19 + $0x8] sm:$0xff]  ;;  %v143_v6 = vld [vmem:[%s113_s19 + $0x20] sm:$0xff]  ;;  %p134_p7 = scmp.lt.s32.totalorder %s384_s15, 15 }
  0x33   : > { %159 = vperm.xlu1 %432, %v141_v1   ;;  %149 = vperm.xlu0 %431, %v139_v2   ;;  %v144_v5 = vld [vmem:[%s113_s19 + $0x28] sm:$0xff]  ;;  %v146_v7 = vld [vmem:[%s113_s19 + $0x38] sm:$0xff]  ;;  %v145_v8 = vld [vmem:[%s113_s19 + $0x30] sm:$0xff] }
  0x34   : > { %s665_s15 = smov (!%p134_p7, %s384_s15), 15 }
  0x35   : > { %s385_s9 = sshll.u32 %s665_s15, 3 }
  0x36   : > { %s624_s21 = scalar_lea.vmem %s656_s1, %s385_s9 }
  0x37   : > { %164 = vperm.xlu1 %432, %v142_v3   ;;  %154 = vperm.xlu0 %431, %v140_v4  }
  0x3b   : > { %174 = vperm.xlu1 %432, %v144_v5   ;;  %169 = vperm.xlu0 %431, %v143_v6  }
  0x3f   : > { %184 = vperm.xlu1 %432, %v146_v7   ;;  %179 = vperm.xlu0 %431, %v145_v8  }
  0xb2   : > { %v160_v9 = vpop.permute.xlu1 %159  ;;  %v150_v10 = vpop.permute.xlu0 %149 }
  0xb3   : > { %v187_v11 = vsub.f32 %v139_v2, %v150_v10  ;;  %v189_v12 = vsub.f32 %v141_v1, %v160_v9 }
  0xb5   : > { %195 = vadd.xlane.f32.xlu0 %v187_v11  ;;  %v211_v25 = vmul.f32 %v187_v11, %v187_v11  ;;  %v213_v27 = vmul.f32 %v189_v12, %v189_v12 }
  0xb6   : > { %v165_v13 = vpop.permute.xlu1 %164  ;;  %v155_v14 = vpop.permute.xlu0 %154 }
  0xb7   : > { %v188_v15 = vsub.f32 %v140_v4, %v155_v14  ;;  %v190_v18 = vsub.f32 %v142_v3, %v165_v13 }
  0xb9   : > { %199 = vadd.xlane.f32.xlu0 %v189_v12  ;;  %197 = vadd.xlane.f32.xlu1 %v188_v15  ;;  %v212_v26 = vmul.f32 %v188_v15, %v188_v15  ;;  %v214_v28 = vmul.f32 %v190_v18, %v190_v18 }
  0xba   : > { %v175_v16 = vpop.permute.xlu1 %174  ;;  %v170_v17 = vpop.permute.xlu0 %169 }
  0xbb   : > { %v191_v19 = vsub.f32 %v143_v6, %v170_v17  ;;  %v192_v21 = vsub.f32 %v144_v5, %v175_v16 }
  0xbd   : > { %201 = vadd.xlane.f32.xlu0 %v190_v18  ;;  %203 = vadd.xlane.f32.xlu1 %v191_v19  ;;  %v215_v29 = vmul.f32 %v191_v19, %v191_v19  ;;  %v216_v30 = vmul.f32 %v192_v21, %v192_v21 }
  0xbe   : > { %v180_v20 = vpop.permute.xlu0 %179  ;;  %v185_v23 = vpop.permute.xlu1 %184 }
  0xbf   : > { %v193_v22 = vsub.f32 %v145_v8, %v180_v20  ;;  %v194_v24 = vsub.f32 %v146_v7, %v185_v23 }
  0xc1   : > { %205 = vadd.xlane.f32.xlu0 %v192_v21  ;;  %207 = vadd.xlane.f32.xlu1 %v193_v22  ;;  %v217_v31 = vmul.f32 %v193_v22, %v193_v22  ;;  %v218_v32 = vmul.f32 %v194_v24, %v194_v24 }
  0xc5   : > { %209 = vadd.xlane.f32.xlu0 %v194_v24  ;;  %219 = vadd.xlane.f32.xlu1 %v211_v25 }
  0xc9   : > { %221 = vadd.xlane.f32.xlu0 %v212_v26  ;;  %223 = vadd.xlane.f32.xlu1 %v213_v27 }
  0xcd   : > { %225 = vadd.xlane.f32.xlu0 %v214_v28  ;;  %227 = vadd.xlane.f32.xlu1 %v215_v29 }
  0xd1   : > { %229 = vadd.xlane.f32.xlu0 %v216_v30  ;;  %231 = vadd.xlane.f32.xlu1 %v217_v31 }
  0xd5   : > { %233 = vadd.xlane.f32.xlu0 %v218_v32 }
 0x142   : > { %v196_v33 = vpop.xlane.xlu0 %195 }
 0x143   : > { %v235_v38 = vmul.f32 %v196_v33, %v196_v33 }
 0x145   : > { %v243_v41 = vmul.f32 0.0078125, %v235_v38 }
 0x146   : > { %v198_v34 = vpop.xlane.xlu1 %197  ;;  %v200_v35 = vpop.xlane.xlu0 %199 }
 0x147   : > { %v236_v42 = vmul.f32 %v198_v34, %v198_v34  ;;  %v237_v43 = vmul.f32 %v200_v35, %v200_v35 }
 0x149   : > { %v244_v48 = vmul.f32 0.0078125, %v236_v42  ;;  %v245_v49 = vmul.f32 0.0078125, %v237_v43 }
 0x14a   : > { %v204_v36 = vpop.xlane.xlu1 %203  ;;  %v202_v37 = vpop.xlane.xlu0 %201 }
 0x14b   : > { %v239_v47 = vmul.f32 %v204_v36, %v204_v36  ;;  %v238_v51 = vmul.f32 %v202_v37, %v202_v37 }
 0x14d   : > { %v247_v57 = vmul.f32 0.0078125, %v239_v47  ;;  %v246_v63 = vmul.f32 0.0078125, %v238_v51 }
 0x14e   : > { %v208_v39 = vpop.xlane.xlu1 %207  ;;  %v206_v40 = vpop.xlane.xlu0 %205 }
 0x14f   : > { %v241_v58 = vmul.f32 %v208_v39, %v208_v39  ;;  %v240_v59 = vmul.f32 %v206_v40, %v206_v40 }
 0x151   : > { %v249_v5 = vmul.f32 0.0078125, %v241_v58  ;;  %v248_v6 = vmul.f32 0.0078125, %v240_v59 }
 0x152   : > { %v220_v44 = vpop.xlane.xlu1 %219  ;;  %v210_v45 = vpop.xlane.xlu0 %209 }
 0x153   : > { %v251_v46 = vsub.f32 %v220_v44, %v243_v41  ;;  %v242_v7 = vmul.f32 %v210_v45, %v210_v45 }
 0x155   : > { %v259_v50 = vmul.f32 0.007874016, %v251_v46  ;;  %v250_v18 = vmul.f32 0.0078125, %v242_v7 }
 0x156   : > { %v224_v52 = vpop.xlane.xlu1 %223  ;;  %v222_v53 = vpop.xlane.xlu0 %221 }
 0x157   : > { %v267_v54 = vmax.f32 %v259_v50, 1e-06  ;;  %v253_v55 = vsub.f32 %v224_v52, %v245_v49  ;;  %v252_v56 = vsub.f32 %v222_v53, %v244_v48 }
 0x159   : > { %v275_v60 = vmin.f32 %v267_v54, 1000000.0  ;;  %v261_v61 = vmul.f32 0.007874016, %v253_v55  ;;  %v260_v62 = vmul.f32 0.007874016, %v252_v56 }
 0x15a   : > { %v228_v0 = vpop.xlane.xlu1 %227  ;;  %v226_v1 = vpop.xlane.xlu0 %225 }
 0x15b   : > { %433 = vlog2.f32 %v275_v60  ;;  %v269_v2 = vmax.f32 %v261_v61, 1e-06  ;;  %v268_v3 = vmax.f32 %v260_v62, 1e-06  ;;  %v255_v4 = vsub.f32 %v228_v0, %v247_v57 }
 0x15c   : > { %v254_v8 = vsub.f32 %v226_v1, %v246_v63 }
 0x15d   : > { %v277_v9 = vmin.f32 %v269_v2, 1000000.0  ;;  %v276_v10 = vmin.f32 %v268_v3, 1000000.0  ;;  %v263_v11 = vmul.f32 0.007874016, %v255_v4 }
 0x15e   : > { %v262_v12 = vmul.f32 0.007874016, %v254_v8  ;;  %v232_v13 = vpop.xlane.xlu1 %231  ;;  %v230_v14 = vpop.xlane.xlu0 %229 }
 0x15f   : > { %435 = vlog2.f32 %v277_v9  ;;  %v271_v15 = vmax.f32 %v263_v11, 1e-06  ;;  %v257_v16 = vsub.f32 %v232_v13, %v249_v5  ;;  %v256_v17 = vsub.f32 %v230_v14, %v248_v6 }
 0x160   : > { %437 = vlog2.f32 %v276_v10  ;;  %v270_v19 = vmax.f32 %v262_v12, 1e-06 }
 0x161   : > { %v279_v20 = vmin.f32 %v271_v15, 1000000.0  ;;  %v265_v21 = vmul.f32 0.007874016, %v257_v16  ;;  %v264_v22 = vmul.f32 0.007874016, %v256_v17 }
 0x162   : > { %v278_v23 = vmin.f32 %v270_v19, 1000000.0  ;;  %v234_v24 = vpop.xlane.xlu0 %233 }
 0x163   : > { %439 = vlog2.f32 %v279_v20  ;;  %v273_v25 = vmax.f32 %v265_v21, 1e-06  ;;  %v272_v26 = vmax.f32 %v264_v22, 1e-06  ;;  %v258_v27 = vsub.f32 %v234_v24, %v250_v18 }
 0x164   : > { %441 = vlog2.f32 %v278_v23 }
 0x165   : > { %v434_v28 = vpop.eup %433  ;;  %v281_v29 = vmin.f32 %v273_v25, 1000000.0  ;;  %v280_v30 = vmin.f32 %v272_v26, 1000000.0  ;;  %v266_v31 = vmul.f32 0.007874016, %v258_v27 }
 0x166   : > { %v284_v32 = vmul.f32 0.6931472, %v434_v28 }
 0x167   : > { %443 = vlog2.f32 %v281_v29  ;;  %v274_v33 = vmax.f32 %v266_v31, 1e-06 }
 0x168   : > { %300 = vst.msk [vmem:[%s624_s21] sm:$0xff] %vm299_vm0, %v284_v32  ;;  %445 = vlog2.f32 %v280_v30 }
 0x169   : > { %v436_v34 = vpop.eup %435  ;;  %v282_v35 = vmin.f32 %v274_v33, 1000000.0 }
 0x16a   : > { %v438_v36 = vpop.eup %437  ;;  %v288_v37 = vmul.f32 0.6931472, %v436_v34 }
 0x16b   : > { %v286_v38 = vmul.f32 0.6931472, %v438_v36  ;;  %447 = vlog2.f32 %v282_v35 }
 0x16c   : > { %302 = vst.msk [vmem:[%s624_s21 + $0x10] sm:$0xff] %vm299_vm0, %v288_v37 }
 0x16d   : > { %v440_v39 = vpop.eup %439  ;;  %301 = vst.msk [vmem:[%s624_s21 + $0x8] sm:$0xff] %vm299_vm0, %v286_v38 }
 0x16e   : > { %v442_v40 = vpop.eup %441  ;;  %v292_v41 = vmul.f32 0.6931472, %v440_v39 }
 0x16f   : > { %v290_v42 = vmul.f32 0.6931472, %v442_v40 }
 0x170   : > { %304 = vst.msk [vmem:[%s624_s21 + $0x20] sm:$0xff] %vm299_vm0, %v292_v41 }
 0x171   : > { %v444_v43 = vpop.eup %443  ;;  %303 = vst.msk [vmem:[%s624_s21 + $0x18] sm:$0xff] %vm299_vm0, %v290_v42 }
 0x172   : > { %v446_v44 = vpop.eup %445  ;;  %v296_v45 = vmul.f32 0.6931472, %v444_v43 }
 0x173   : > { %v294_v46 = vmul.f32 0.6931472, %v446_v44 }
 0x174   : > { %306 = vst.msk [vmem:[%s624_s21 + $0x30] sm:$0xff] %vm299_vm0, %v296_v45 }
 0x175   : > { %v448_v47 = vpop.eup %447  ;;  %305 = vst.msk [vmem:[%s624_s21 + $0x28] sm:$0xff] %vm299_vm0, %v294_v46 }
 0x176   : > { %v298_v48 = vmul.f32 0.6931472, %v448_v47 }
 0x178   : > { %307 = vst.msk [vmem:[%s624_s21 + $0x38] sm:$0xff] %vm299_vm0, %v298_v48 }
 0x179 PF: > { %p11_p8 = scmp.ge.s32.totalorder %s549_s11, 4   ;;  %s660_s6 = smov %s505_s7 }
 0x17a   : > { %s661_s7 = smov %s509_s8  ;;  %s662_s8 = smov %s559_s14 }
 0x17b   : > { %s663_s9 = smov %s549_s11  ;;  %13 = sbr.rel (!%p11_p8) target bundleno = 3 (0x3), region = 64 }
 0x182   :  { %330 = vsyncpa [#allocation3], 1 }
 0x183   :  { %332 = vsyncpa [#allocation3 + $0x1], 1 }

</bundles_post_ra>
